<compile_context>
chip_gen: v5e
topology: v5e:2x2
jax: 0.10.0
libtpu: 0.0.40
codegen_flags: <defaults>
</compile_context>

<pallas_src>
import math

import jax
import jax.numpy as jnp
from jax import lax
from jax.experimental import pallas as pl
from jax.experimental.pallas import tpu as pltpu


def _qkv_attention_kernel(q_ref, k_ref, v_ref, o_ref, *, inv_sqrt_ch):
    """One grid step: G heads of one batch element, one query tile.

    q_ref: [G, C, Tq]    k_ref, v_ref: [G, C, S]    o_ref: [G, C, Tq]
    """
    q = q_ref[...]
    k = k_ref[...]
    v = v_ref[...]

    # scale*scale == 1/sqrt(ch), applied once on the small q tile in its
    # native dtype (bf16 stays bf16 -> bf16-native MXU path).
    q = q * jnp.asarray(inv_sqrt_ch, dtype=q.dtype)

    # logits[g, t, s] = sum_c q[g, c, t] * k[g, c, s]   (f32 accumulation)
    w = lax.dot_general(
        q, k,
        dimension_numbers=(((1,), (1,)), ((0,), (0,))),
        preferred_element_type=jnp.float32,
    )                                                     # [G, Tq, S] f32

    # Numerically stable softmax numerator in f32; the normalization is
    # deferred past the PV matmul so it runs on a [G, Tq, C] tensor instead
    # of the [G, Tq, S] probabilities (C << S).
    w = w - jnp.max(w, axis=-1, keepdims=True)
    p = jnp.exp(w)                                        # unnormalized, in [0, 1]
    denom = jnp.sum(p, axis=-1, keepdims=True)            # [G, Tq, 1] f32
    p = p.astype(v.dtype)                                 # matches torch's cast

    # a[g, t, c] = sum_s p[g, t, s] * v[g, c, s].  p is the LHS so the MXU's
    # implicit operand transpose hits the small [C, S] v tile, not a T x T
    # relayout of the probabilities.
    a = lax.dot_general(
        p, v,
        dimension_numbers=(((2,), (2,)), ((0,), (0,))),
        preferred_element_type=jnp.float32,
    )                                                     # [G, Tq, C] f32

    # Deferred, exact softmax normalization (cheap: tiny denom reciprocal +
    # a C-wide multiply per query row).
    a = a * pl.reciprocal(denom, approx=False)

    # [Tq, C] -> [C, Tq] swap (C x Tq work, not T x T) and lane-dense store.
    o_ref[...] = jnp.swapaxes(a, 1, 2).astype(o_ref.dtype)


def _vmem_capacity_bytes():
    """Physical per-core VMEM; conservative 64 MiB (v7x) if the query fails."""
    try:
        return int(pltpu.get_tpu_info().vmem_capacity_bytes)
    except Exception:
        return 64 * 1024 * 1024


def _pick_tiles(n_heads, ch, length, itemsize, budget_bytes, batch):
    """Choose (head-group G, query tile tq) so one step's footprint fits."""
    # Query tile: largest 128-multiple divisor of T up to 512, else full T
    # (full-dim blocks are always legal; sub-tiles must be 128-aligned).
    tq = length
    if length % 128 == 0:
        for cand in (512, 384, 256, 128):
            if cand <= length and length % cand == 0:
                tq = cand
                break
    n_qt = length // tq

    def step_bytes(g):
        io = 2 * g * ch * (2 * length + 2 * tq) * itemsize   # k,v + q,out, 2x buffered
        interm = 2 * g * tq * length * 4                     # f32 logits + exp
        interm += 2 * g * ch * max(tq, length) * 4           # f32 PV acc + relayouts
        return io + interm

    # Guarantee >= 2 grid steps when possible so both v7x TensorCores get work.
    max_group = n_heads
    if batch * n_qt < 2 and n_heads > 1:
        max_group = max(1, n_heads // 2)

    g = max_group
    while g > 1 and (n_heads % g != 0 or step_bytes(g) > budget_bytes):
        g -= 1
    return g, tq, n_qt, step_bytes(g)


def qkv_attention(qkv, n_heads):
    """qkv: [N, 3*H*C, T] -> [N, H*C, T], same semantics as the PyTorch module."""
    bs, width, length = qkv.shape
    assert width % (3 * n_heads) == 0
    ch = width // (3 * n_heads)
    inv_sqrt_ch = 1.0 / math.sqrt(ch)            # == scale * scale

    # Metadata-only reshape of the packed tensor; blocks are DMA'd out of it
    # directly by the index_maps below.
    qkv5 = qkv.reshape(bs, 3, n_heads, ch, length)

    itemsize = jnp.dtype(qkv.dtype).itemsize
    vmem_cap = _vmem_capacity_bytes()
    # Tiling budget: ~half of physical VMEM (capped at 64 MiB) so 128 MiB
    # parts (v5e/v6e) get big tiles while v7x keeps compiler headroom.
    budget = min(vmem_cap // 2, 64 * 1024 * 1024)
    group, tq, n_qt, step_bytes = _pick_tiles(
        n_heads, ch, length, itemsize, budget, bs)
    n_groups = n_heads // group

    # TODO(synk): for huge T that is not a multiple of 128 (so tq == T) the
    # [tq, T] f32 logits can still exceed VMEM; that regime needs a kv-tiled
    # online-softmax (flash-style) variant.
    # TODO(synk): padding T to a multiple of 128 (with -inf key masking) would
    # make stores lane-dense for awkward lengths; skipped to avoid the extra
    # pad/slice HBM passes.

    q_spec = pl.BlockSpec((None, None, group, ch, tq),
                          lambda n, g, t: (n, 0, g, 0, t))
    k_spec = pl.BlockSpec((None, None, group, ch, length),
                          lambda n, g, t: (n, 1, g, 0, 0))
    v_spec = pl.BlockSpec((None, None, group, ch, length),
                          lambda n, g, t: (n, 2, g, 0, 0))
    out_spec = pl.BlockSpec((None, group, ch, tq),
                            lambda n, g, t: (n, g, 0, t))

    kernel = lambda qr, kr, vr, orf: _qkv_attention_kernel(
        qr, kr, vr, orf, inv_sqrt_ch=inv_sqrt_ch)

    # Scoped-VMEM request: chosen tiles + headroom, >= 32 MiB (v5e default is
    # only 16 MiB), never more than ~85% of physical VMEM.
    vmem_limit = int(min(max(32 * 1024 * 1024, step_bytes + (8 << 20)),
                         int(0.85 * vmem_cap)))

    cost = pl.CostEstimate(
        flops=4 * bs * n_heads * ch * length * length,
        transcendentals=bs * n_heads * length * length,
        bytes_accessed=4 * bs * n_heads * ch * length * itemsize,
    )

    out = pl.pallas_call(
        kernel,
        out_shape=jax.ShapeDtypeStruct((bs, n_heads, ch, length), qkv.dtype),
        grid_spec=pltpu.PrefetchScalarGridSpec(
            num_scalar_prefetch=0,
            grid=(bs, n_groups, n_qt),
            in_specs=[q_spec, k_spec, v_spec],
            out_specs=out_spec,
        ),
        compiler_params=pltpu.CompilerParams(
            # All steps are independent -> shards across the 2 TCs on v7x.
            dimension_semantics=("parallel", "parallel", "parallel"),
            vmem_limit_bytes=vmem_limit,
        ),
        cost_estimate=cost,
    )(qkv5, qkv5, qkv5)

    return out.reshape(bs, n_heads * ch, length)


def _reference(qkv, n_heads):
    # Pure-JAX port of the PyTorch module (q and k each scaled by ch^-0.25,
    # softmax in f32, probabilities cast back to the input dtype before PV).
    bs, width, length = qkv.shape
    ch = width // (3 * n_heads)
    q, k, v = jnp.split(qkv, 3, axis=1)
    scale = 1.0 / math.sqrt(math.sqrt(ch))
    q = q.reshape(bs * n_heads, ch, length) * scale
    k = k.reshape(bs * n_heads, ch, length) * scale
    v = v.reshape(bs * n_heads, ch, length)
    prec = jax.lax.Precision.HIGHEST  # emulate torch's exact f32 matmuls
    w = jnp.einsum("bct,bcs->bts", q, k, precision=prec)
    w = jax.nn.softmax(w.astype(jnp.float32), axis=-1).astype(qkv.dtype)
    a = jnp.einsum("bts,bcs->bct", w, v, precision=prec)
    return a.reshape(bs, -1, length)


if __name__ == "__main__":
    key = jax.random.PRNGKey(0)
    key_a, key_b = jax.random.split(key)

    # Case 1: small f32 (whole-T blocks, masked-lane path).
    N, H, C, T = 2, 2, 8, 16
    qkv32 = jax.random.normal(key_a, (N, 3 * H * C, T), dtype=jnp.float32)
    out32 = jax.block_until_ready(qkv_attention(qkv32, n_heads=H))
    ref32 = _reference(qkv32, n_heads=H)
    assert out32.shape == (N, H * C, T), out32.shape
    # Tolerance covers the MXU's bf16-decomposed f32 matmul passes vs the
    # HIGHEST-precision reference.
    assert jnp.allclose(out32, ref32, atol=1e-2, rtol=1e-2), "f32 mismatch"

    # Case 2: bf16, 128-aligned query-tile path, >=2 grid steps.
    N2, H2, C2, T2 = 1, 4, 64, 256
    qkv16 = jax.random.normal(key_b, (N2, 3 * H2 * C2, T2), dtype=jnp.bfloat16)
    out16 = jax.block_until_ready(qkv_attention(qkv16, n_heads=H2))
    ref16 = _reference(qkv16, n_heads=H2)
    assert out16.shape == (N2, H2 * C2, T2), out16.shape
    assert jnp.allclose(out16.astype(jnp.float32), ref16.astype(jnp.float32),
                        atol=3e-2, rtol=3e-2), "bf16 mismatch"

    print("KERNEL_OK")
</pallas_src>

<mosaic_0001>
module attributes {stable_mosaic.version = 11 : i64} {
  func.func @_lambda_(%arg0: i32, %arg1: i32, %arg2: i32, %arg3: memref<1x1x2x8x16xf32, #tpu.memory_space<vmem>>, %arg4: memref<1x1x2x8x16xf32, #tpu.memory_space<vmem>>, %arg5: memref<1x1x2x8x16xf32, #tpu.memory_space<vmem>>, %arg6: memref<1x2x8x16xf32, #tpu.memory_space<vmem>>) attributes {dimension_semantics = [#tpu.dimension_semantics<parallel>, #tpu.dimension_semantics<parallel>, #tpu.dimension_semantics<parallel>], iteration_bounds = array<i64: 2, 1, 1>, scalar_prefetch = 0 : i64, scratch_operands = 0 : i64, tpu.core_type = #tpu.core_type<tc>, window_params = [{transform_indices = @transform_0, window_bounds = array<i64: 1, 1, 2, 8, 16>}, {transform_indices = @transform_1, window_bounds = array<i64: 1, 1, 2, 8, 16>}, {transform_indices = @transform_2, window_bounds = array<i64: 1, 1, 2, 8, 16>}, {transform_indices = @transform_3, window_bounds = array<i64: 1, 2, 8, 16>}]} {
    %c0 = arith.constant 0 : index
    %c0_0 = arith.constant 0 : index
    %c0_1 = arith.constant 0 : index
    %c0_2 = arith.constant 0 : index
    %c0_3 = arith.constant 0 : index
    %0 = vector.load %arg3[%c0, %c0_0, %c0_1, %c0_2, %c0_3] : memref<1x1x2x8x16xf32, #tpu.memory_space<vmem>>, vector<1x1x2x8x16xf32>
    %1 = vector.shape_cast %0 : vector<1x1x2x8x16xf32> to vector<2x8x16xf32>
    %c0_4 = arith.constant 0 : index
    %c0_5 = arith.constant 0 : index
    %c0_6 = arith.constant 0 : index
    %c0_7 = arith.constant 0 : index
    %c0_8 = arith.constant 0 : index
    %2 = vector.load %arg4[%c0_4, %c0_5, %c0_6, %c0_7, %c0_8] : memref<1x1x2x8x16xf32, #tpu.memory_space<vmem>>, vector<1x1x2x8x16xf32>
    %3 = vector.shape_cast %2 : vector<1x1x2x8x16xf32> to vector<2x8x16xf32>
    %c0_9 = arith.constant 0 : index
    %c0_10 = arith.constant 0 : index
    %c0_11 = arith.constant 0 : index
    %c0_12 = arith.constant 0 : index
    %c0_13 = arith.constant 0 : index
    %4 = vector.load %arg5[%c0_9, %c0_10, %c0_11, %c0_12, %c0_13] : memref<1x1x2x8x16xf32, #tpu.memory_space<vmem>>, vector<1x1x2x8x16xf32>
    %5 = vector.shape_cast %4 : vector<1x1x2x8x16xf32> to vector<2x8x16xf32>
    %cst = arith.constant 0.353553385 : f32
    %6 = vector.broadcast %cst : f32 to vector<2x8x16xf32>
    %7 = arith.mulf %1, %6 : vector<2x8x16xf32>
    %cst_14 = arith.constant dense<0.000000e+00> : vector<2x16x16xf32>
    %8 = tpu.matmul %7, %3, %cst_14 {dimension_numbers = #tpu.dot_dimension_numbers<[1], [1], [2], [2], [0, 0, 0, 2, 1, 2], [0], [0]>} : vector<2x8x16xf32>, vector<2x8x16xf32>, vector<2x16x16xf32> -> vector<2x16x16xf32>
    %cst_15 = arith.constant dense<0xFF800000> : vector<2x16xf32>
    %9 = vector.multi_reduction <maximumf>, %8, %cst_15 [2] : vector<2x16x16xf32> to vector<2x16xf32>
    %10 = vector.shape_cast %9 : vector<2x16xf32> to vector<2x16x1xf32>
    %11 = vector.broadcast %10 : vector<2x16x1xf32> to vector<2x16x16xf32>
    %12 = arith.subf %8, %11 : vector<2x16x16xf32>
    %13 = math.exp %12 : vector<2x16x16xf32>
    %cst_16 = arith.constant dense<0.000000e+00> : vector<2x16xf32>
    %14 = vector.multi_reduction <add>, %13, %cst_16 [2] : vector<2x16x16xf32> to vector<2x16xf32>
    %15 = vector.shape_cast %14 : vector<2x16xf32> to vector<2x16x1xf32>
    %cst_17 = arith.constant dense<0.000000e+00> : vector<2x16x8xf32>
    %16 = tpu.matmul %13, %5, %cst_17 {dimension_numbers = #tpu.dot_dimension_numbers<[2], [2], [1], [1], [0, 0, 0, 1, 1, 1], [0], [0]>} : vector<2x16x16xf32>, vector<2x8x16xf32>, vector<2x16x8xf32> -> vector<2x16x8xf32>
    %17 = tpu.reciprocal %15 : vector<2x16x1xf32> -> vector<2x16x1xf32>
    %18 = vector.broadcast %17 : vector<2x16x1xf32> to vector<2x16x8xf32>
    %19 = arith.mulf %16, %18 : vector<2x16x8xf32>
    %20 = tpu.transpose %19, [0, 2, 1] : vector<2x16x8xf32> -> vector<2x8x16xf32>
    %c0_18 = arith.constant 0 : index
    %c0_19 = arith.constant 0 : index
    %c0_20 = arith.constant 0 : index
    %c0_21 = arith.constant 0 : index
    %21 = vector.load %arg6[%c0_18, %c0_19, %c0_20, %c0_21] : memref<1x2x8x16xf32, #tpu.memory_space<vmem>>, vector<1x2x8x16xf32>
    %22 = vector.shape_cast %21 : vector<1x2x8x16xf32> to vector<2x8x16xf32>
    %23 = vector.shape_cast %20 : vector<2x8x16xf32> to vector<1x2x8x16xf32>
    tpu.vector_store %arg6[%c0_18, %c0_19, %c0_20, %c0_21], %23 {strides = array<i32>} : memref<1x2x8x16xf32, #tpu.memory_space<vmem>>, vector<1x2x8x16xf32>,
    return
  }
  func.func @transform_0(%arg0: i32, %arg1: i32, %arg2: i32) -> (i32, i32, i32, i32, i32) {
    %c0_i32 = arith.constant 0 : i32
    %c0_i32_0 = arith.constant 0 : i32
    %c0_i32_1 = arith.constant 0 : i32
    return %arg0, %c0_i32, %arg1, %c0_i32_0, %arg2 : i32, i32, i32, i32, i32
  }
  func.func @transform_1(%arg0: i32, %arg1: i32, %arg2: i32) -> (i32, i32, i32, i32, i32) {
    %c1_i32 = arith.constant 1 : i32
    %c0_i32 = arith.constant 0 : i32
    %c0_i32_0 = arith.constant 0 : i32
    %c0_i32_1 = arith.constant 0 : i32
    return %arg0, %c1_i32, %arg1, %c0_i32, %c0_i32_0 : i32, i32, i32, i32, i32
  }
  func.func @transform_2(%arg0: i32, %arg1: i32, %arg2: i32) -> (i32, i32, i32, i32, i32) {
    %c2_i32 = arith.constant 2 : i32
    %c0_i32 = arith.constant 0 : i32
    %c0_i32_0 = arith.constant 0 : i32
    %c0_i32_1 = arith.constant 0 : i32
    return %arg0, %c2_i32, %arg1, %c0_i32, %c0_i32_0 : i32, i32, i32, i32, i32
  }
  func.func @transform_3(%arg0: i32, %arg1: i32, %arg2: i32) -> (i32, i32, i32, i32) {
    %c0_i32 = arith.constant 0 : i32
    %c0_i32_0 = arith.constant 0 : i32
    return %arg0, %arg1, %c0_i32, %arg2 : i32, i32, i32, i32
  }
}

</mosaic_0001>

<bundles_post_ra>
// kernel: tpu_custom_call.1
= control target key start
LH: loop header
LB: loop body
LE: loop exit
PB: predicated region body
PF: predicated region fallthrough
CT: control target
= control target key end

     0   :  { %s1347_s0 = inlined_call_operand.hbm [shape: f32[2,3,2,8,16], index: 0, kind: input, shape index: {}]   ;;  %s1348_s1 = inlined_call_operand.hbm [shape: f32[2,3,2,8,16], index: 1, kind: input, shape index: {}]   ;;  %s1349_s2 = inlined_call_operand.hbm [shape: f32[2,3,2,8,16], index: 2, kind: input, shape index: {}]   ;;  %s1350_s3 = inlined_call_operand.hbm [shape: f32[2,2,8,16], index: 3, kind: output, shape index: {}]  }
   0x1   :  { %1357 = sst [smem:[#allocation18_spill]] %s1348_s1 }
   0x2   :  { %8 = vsyncpa [#allocation3], 0 }
   0x3   :  { %10 = vsyncpa [#allocation3 + $0x1], 0 }
   0x4   :  { %11 = vsyncpa [#allocation6], 0 }
   0x5   :  { %13 = vsyncpa [#allocation6 + $0x1], 0 }
   0x6   :  { %14 = vsyncpa [#allocation4], 0 }
   0x7   :  { %16 = vsyncpa [#allocation4 + $0x1], 0  ;;  %s1163_s12 = smov 0   ;;  %s1165_s13 = smov 0  }
   0x8   :  { %s1167_s14 = smov 0   ;;  %s1169_s15 = smov 0  }
   0x9   :  { %s1171_s16 = smov 0   ;;  %s1173_s17 = smov 0  }
   0xa LB: > { %1358 = sst [smem:[#allocation12_spill]] %s1125_s14  ;;  %s1194_s18 = sadd.s32 4294967295, %s1137_s17   ;;  %s1137_s17 = sphi %s1173_s17, %s22_s17   ;;  %s1133_s16 = sphi %s1171_s16, %s1376_s16   ;;  %s1129_s15 = sphi %s1169_s15, %s1375_s15   ;;  %s1125_s14 = sphi %s1167_s14, %s1379_s14   ;;  %s1121_s13 = sphi %s1165_s13, %s1378_s13   ;;  %s1117_s12 = sphi %s1163_s12, %s1377_s12  }
   0xb   : > { %1359 = sst [smem:[#allocation13_spill]] %s1133_s16  ;;  %s837_s19 = sadd.s32 4294967294, %s1137_s17  }
   0xc   : > { %1360 = sst [smem:[#allocation14_spill]] %s1137_s17  ;;  %s41_s20 = sadd.s32 1, %s1133_s16 }
   0xd   : > { %s52_s21 = sadd.s32 1, %s1125_s14  ;;  %p43_p0 = scmp.ge.s32.totalorder %s41_s20, 2 }
   0xe   : > { %p59_p1 = scmp.ne.s32.totalorder %s1125_s14, %s1121_s13  ;;  %p60_p2 = scmp.eq.s32.totalorder %s1137_s17, 0 }
   0xf   : > { %p65_p3 = scmp.ne.s32.totalorder %s1121_s13, %s1117_s12  ;;  %s1381_s20 = smov (%p43_p0, %s41_s20), 0 }
  0x10   : > { %1361 = sst [smem:[#allocation15_spill]] %s1381_s20  ;;  %p1206_p4 = por %p60_p2, %p59_p1 }
  0x11   : > { %p66_p5 = scmp.eq.s32.totalorder %s1194_s18, 0  ;;  %s45_s23 = ssub.s32 %s1133_s16, %s1381_s20 }
  0x12   : > { %p149_p6 = scmp.eq.s32.totalorder %s1194_s18, 1  ;;  %p50_p7 = scmp.eq.s32.totalorder %s45_s23, 0 }
  0x13   : > { %p1214_p8 = por %p66_p5, %p65_p3  ;;  %p155_p10 = scmp.eq.s32.totalorder %s837_s19, 1 }
  0x14   : > { %p1218_p9 = por %p149_p6, %p59_p1  ;;  %p839_p12 = scmp.ge.s32.totalorder %s1137_s17, 2 }
  0x15   : > { %s1223_s26 = scalar_select %p50_p7, %s1125_s14, %s52_s21  }
  0x16   : > { %p1225_p11 = por %p155_p10, %p65_p3  ;;  %p890_p13 = scmp.lt.s32.totalorder %s1137_s17, 2 }
  0x17   : > { %1365 = sst [smem:[#allocation16_spill]] %s1223_s26  ;;  %s175_s28 = sand.u32 1, %s1125_s14  }
  0x18   : > { %s1366_s27 = scalar_select %p1225_p11, 1, 0 }
  0x19   : > { %s1232_s29 = sshll.u32 %s175_s28, 4  ;;  %s1235_s30 = smul.u32 48, %s1133_s16 }
  0x1a   : > { %1367 = sst [smem:[#allocation17_spill]] %s1366_s27  ;;  %p1239_p0 = pnand %p890_p13, %p1206_p4 }
  0x1b   : > { %s200_s5 = sand.u32 1, %s1137_s17   ;;  %s1369_s1 = sld [smem:[#allocation18_spill]] }
  0x1c   : > { %s204_s10 = scalar_lea.vmem [#allocation5], %s1232_s29  ;;  %p846_p1 = scmp.ge.s32.totalorder %s1137_s17, 1 }
  0x1d   : > { %s215_s11 = sshll.u32 %s204_s10, 4  ;;  %s201_s21 = scalar_lea.sflag [#allocation6], %s200_s5  ;;  %s216_s11 = int_to_ptr.vmem [resolvable:$true] %s215_s11 }
  0x1e   : > { %s1139_s22 = smov 128   ;;  %s1140_s23 = smov 8  }
  0x1f   : > { %p248_p2 = scmp.lt.s32.totalorder %s1137_s17, 3  ;;  %s179_s10 = scalar_lea.vmem [#allocation2], %s1232_s29 }
  0x20   : > { %s176_s5 = scalar_lea.sflag [#allocation3], %s175_s28  ;;  %s229_s26 = scalar_lea.vmem [#allocation7], %s1232_s29 }
  0x21   : > { %s739_s8 = scalar_lea.hbm %s1369_s1, %s1235_s30  ;;  %p1253_p3 = pnand %p846_p1, %p248_p2 }
  0x22   : > { %s740_s9 = scalar_lea.hbm %s739_s8, 16  ;;  %s190_s1 = sshll.u32 %s179_s10, 4  ;;  %s191_s1 = int_to_ptr.vmem [resolvable:$true] %s190_s1 }
  0x23   : > { %s213_s19 = sshll.u32 %s740_s9, 4  ;;  %s187_s9 = scalar_lea.hbm %s1347_s0, %s1235_s30  ;;  %s214_s19 = int_to_ptr.hbm [resolvable:$true] %s213_s19 }
  0x24   : > { %882 = dma.hbm_to_vmem [thread:$0]  (!%p1239_p0), %s214_s19, 256, %s216_s11, %s201_s21, %s1139_s22, %s1139_s22, %s1140_s23  }
  0x25   : > { %s188_s20 = sshll.u32 %s187_s9, 4  ;;  %s748_s19 = scalar_lea.hbm %s1349_s2, %s1235_s30  ;;  %s189_s20 = int_to_ptr.hbm [resolvable:$true] %s188_s20 }
  0x26   : > { %879 = dma.hbm_to_vmem [thread:$0]  (!%p1239_p0), %s189_s20, 256, %s191_s1, %s176_s5, %s1139_s22, %s1139_s22, %s1140_s23  }
  0x27   : > { %s240_s14 = sshll.u32 %s229_s26, 4  ;;  %s749_s17 = scalar_lea.hbm %s748_s19, 32  ;;  %s241_s14 = int_to_ptr.vmem [resolvable:$true] %s240_s14 }
  0x28   : > { %s238_s27 = sshll.u32 %s749_s17, 4  ;;  %252 = sbr.rel (%p1253_p3) target bundleno = 792 (0x318), region = 32  ;;  %s239_s27 = int_to_ptr.hbm [resolvable:$true] %s238_s27 }
  0x29   : > { %885 = dma.hbm_to_vmem [thread:$0]  (!%p1239_p0), %s239_s27, 256, %s241_s14, %s201_s21, %s1139_s22, %s1139_s22, %s1140_s23  }
  0x2a   : > { %s1274_s28 = sand.u32 (!%p1253_p3), 1, %s1121_s13  }
  0x2b   : > { %s1277_s1 = sshll.u32 (!%p1253_p3), %s1274_s28, 4  ;;  %s255_s16 = scalar_lea.sflag (!%p1253_p3), [#allocation3], %s1274_s28 }
  0x2c   : > { %s258_s20 = scalar_lea.vmem (!%p1253_p3), [#allocation2], %s1277_s1 }
  0x2d   : > { %1104 = dma.done.wait (%p1214_p8), %s255_s16, 256  }
  0x2e   : > { %1106 = vsyncadd (%p1214_p8), %s255_s16, 4294967040  ;;  %s264_s14 = sand.u32 1, %s1194_s18   ;;  %s268_s26 = scalar_lea.vmem [#allocation5], %s1277_s1 }
  0x2f   : > { %s265_s17 = scalar_lea.sflag [#allocation6], %s264_s14 }
  0x30   : > { %1108 = dma.done.wait (%p1214_p8), %s265_s17, 512  }
  0x31   : > { %1110 = vsyncadd (%p1214_p8), %s265_s17, 4294966784  ;;  %v316_v0 = vld [vmem:[%s258_s20] sm:$0xff]  ;;  %v317_v3 = vld [vmem:[%s258_s20 + $0x8] sm:$0xff]  ;;  %vm356_vm0 = vcmask 64512   ;;  %vm447_vm1 = vcmask 130048   ;;  %s278_s18 = scalar_lea.vmem [#allocation7], %s1277_s1 }
  0x32   : > { %v318_v1 = vld [vmem:[%s268_s26] sm:$0xff]  ;;  %v322_v2 = vmul.f32 0.35355338, %v316_v0  ;;  %v323_v4 = vmul.f32 0.35355338, %v317_v3  ;;  %v319_v5 = vld [vmem:[%s268_s26 + $0x8] sm:$0xff] }
  0x33   : > { %378 = vmatpush.msra.mxu0 %v318_v1  ;;  %439 = vmatpush.msra.mxu1 %v319_v5  ;;  %v320_v18 = vld [vmem:[%s278_s18] sm:$0xff]  ;;  %v321_v19 = vld [vmem:[%s278_s18 + $0x8] sm:$0xff]  ;;  %s311_s24 = scalar_lea.vmem [#allocation8], %s1277_s1  ;;  %s866_s27 = sshll.u32 %s1129_s15, 4 }
  0x34   : > { %324 = vxpose.xlu0.b32.start.end [1/1] (short) (narrow) %v322_v2, 16  ;;  %855 = vmatpush.xpose.msk.msra.mxu2 %vm447_vm1, %v320_v18  ;;  %s689_s4 = scalar_lea.hbm %s1350_s3, %s866_s27  ;;  %s690_s21 = sshll.u32 %s311_s24, 4  ;;  %s691_s21 = int_to_ptr.vmem [resolvable:$true] %s690_s21 }
  0x35   : > { %858 = vmatpush.xpose.msk.msra.mxu3 %vm447_vm1, %v321_v19  ;;  %s692_s22 = sshll.u32 %s689_s4, 4  ;;  %s675_s23 = scalar_lea.sflag [#allocation4], %s1274_s28  ;;  %s693_s22 = int_to_ptr.hbm [resolvable:$true] %s692_s22 }
  0x36   : > { %s1065_s6 = sshra.s32 %s693_s22, 4  ;;  %s1071_s9 = scalar_lea.hbm %s1350_s3, 32  ;;  %s1066_s6 = int_to_ptr.hbm [resolvable:$true] %s1065_s6 }
  0x37   : > { %s1067_s7 = scalar_lea.hbm %s1066_s6, 16  ;;  %p1072_p7 = scmp.lt.s32.totalorder %s1066_s6, %s1350_s3 }
  0x38   : > { %p1068_p4 = scmp.ne.s32.totalorder %s1066_s6, %s1067_s7  ;;  %p1073_p8 = scmp.lt.s32.totalorder %s1071_s9, %s1067_s7 }
  0x3a   : > { %p1069_p5 = pnand %p1068_p4, %p1218_p9  ;;  %p1074_p10 = por %p1073_p8, %p1072_p7 }
  0x3c   : > { %p1070_p6 = pneg %p1069_p5 }
  0x3e   : > { %p1075_p13 = pnand %p1074_p10, %p1070_p6 }
  0x44   : > { %386 = vxpose.xlu0.b32.start.end [1/1] (short) (narrow) %v323_v4, 16 }
  0xd8   : > { %v340_v6 = vpop.trf.xlu0 }
  0xd9   : > { %851 = vmatmul.msk.f32.vlgmr.msra.gmra.mxu0 %vm356_vm0, %v340_v6 }
  0xe0   : > { %v341_v7 = vpop.trf.xlu0 }
  0xe1   : > { %852 = vmatmul.msk.f32.gmra.mxu0 %vm356_vm0, %v341_v7 }
  0xe8   : > { %v402_v8 = vpop.trf.xlu0 }
  0xe9   : > { %853 = vmatmul.msk.f32.vlgmr.msra.gmra.mxu1 %vm356_vm0, %v402_v8 }
  0xf0   : > { %v403_v9 = vpop.trf.xlu0 }
  0xf1   : > { %854 = vmatmul.msk.f32.gmra.mxu1 %vm356_vm0, %v403_v9 }
 0x156   : > { %v380_v10 = vpop.f32.mrf.mxu0 }
 0x157   : > { %v448_v11 = vsel %vm447_vm1, %v380_v10, -inf }
 0x158   : > { %449 = vmax.xlane.f32.xlu1 %v448_v11 }
 0x15e   : > { %v383_v12 = vpop.f32.mrf.mxu0 }
 0x15f   : > { %v451_v13 = vsel %vm447_vm1, %v383_v12, -inf }
 0x160   : > { %452 = vmax.xlane.f32.xlu2 %v451_v13 }
 0x166   : > { %v441_v14 = vpop.f32.mrf.mxu1 }
 0x167   : > { %v454_v15 = vsel %vm447_vm1, %v441_v14, -inf }
 0x168   : > { %455 = vmax.xlane.f32.xlu1 %v454_v15 }
 0x16e   : > { %v444_v16 = vpop.f32.mrf.mxu1 }
 0x16f   : > { %v457_v17 = vsel %vm447_vm1, %v444_v16, -inf }
 0x170   : > { %458 = vmax.xlane.f32.xlu2 %v457_v17 }
 0x1cb   : > { %v450_v20 = vpop.xlane.xlu1 %449 }
 0x1cc   : > { %v460_v21 = vsub.f32 %v380_v10, %v450_v20 }
 0x1ce   : > { %v464_v22 = vmul.f32 1.442695, %v460_v21 }
 0x1d0   : > { %945 = vpow2.f32 %v464_v22 }
 0x1d3   : > { %v453_v23 = vpop.xlane.xlu2 %452 }
 0x1d4   : > { %v461_v24 = vsub.f32 %v383_v12, %v453_v23 }
 0x1d6   : > { %v946_v25 = vpop.eup %945  ;;  %v466_v26 = vmul.f32 1.442695, %v461_v24 }
 0x1d7   : > { %856 = vmatmul.msk.f32.vlgmr.msra.gmra.mxu2 %vm447_vm1, %v946_v25  ;;  %v472_v27 = vsel %vm447_vm1, %v946_v25, 0.0 }
 0x1d8   : > { %947 = vpow2.f32 %v466_v26  ;;  %473 = vadd.xlane.f32.xlu1 %v472_v27 }
 0x1db   : > { %v456_v28 = vpop.xlane.xlu1 %455 }
 0x1dc   : > { %v462_v29 = vsub.f32 %v441_v14, %v456_v28 }
 0x1de   : > { %v948_v30 = vpop.eup %947  ;;  %v468_v31 = vmul.f32 1.442695, %v462_v29 }
 0x1df   : > { %857 = vmatmul.msk.f32.gmra.mxu2 %vm447_vm1, %v948_v30  ;;  %v475_v32 = vsel %vm447_vm1, %v948_v30, 0.0 }
 0x1e0   : > { %949 = vpow2.f32 %v468_v31  ;;  %476 = vadd.xlane.f32.xlu0 %v475_v32 }
 0x1e3   : > { %v459_v33 = vpop.xlane.xlu2 %458 }
 0x1e4   : > { %v463_v34 = vsub.f32 %v444_v16, %v459_v33 }
 0x1e6   : > { %v950_v35 = vpop.eup %949  ;;  %v470_v36 = vmul.f32 1.442695, %v463_v34 }
 0x1e7   : > { %859 = vmatmul.msk.f32.vlgmr.msra.gmra.mxu3 %vm447_vm1, %v950_v35  ;;  %v478_v37 = vsel %vm447_vm1, %v950_v35, 0.0 }
 0x1e8   : > { %951 = vpow2.f32 %v470_v36  ;;  %479 = vadd.xlane.f32.xlu2 %v478_v37 }
 0x1ee   : > { %v952_v38 = vpop.eup %951 }
 0x1ef   : > { %860 = vmatmul.msk.f32.gmra.mxu3 %vm447_vm1, %v952_v38  ;;  %v481_v39 = vsel %vm447_vm1, %v952_v38, 0.0 }
 0x1f0   : > { %482 = vadd.xlane.f32.xlu1 %v481_v39 }
 0x24b   : > { %v474_v40 = vpop.xlane.xlu1 %473 }
 0x24c   : > { %953 = vrcp.f32 %v474_v40  ;;  %v559_v45 = vand.u32 2147483648, %v474_v40  ;;  %v557_v47 = vand.u32 2147483647, %v474_v40  ;;  %vm553_vm3 = vweird.f32 %v474_v40 }
 0x24e   : > { %v560_v51 = vor.u32 1.1754944e-38, %v559_v45  ;;  %vm558_vm5 = vcmp.eq.f32.partialorder %v557_v47, 8.507059e+37 }
 0x252   : > { %v954_v41 = vpop.eup %953 }
 0x253   : > { %v549_v42 = vmul.f32 %v954_v41, %v474_v40  ;;  %v477_v43 = vpop.xlane.xlu0 %476  ;;  %vm554_vm2 = vweird.f32 %v954_v41 }
 0x254   : > { %955 = vrcp.f32 %v477_v43  ;;  %vm555_vm4 = vmor %vm553_vm3, %vm554_vm2  ;;  %v573_v58 = vand.u32 2147483648, %v477_v43  ;;  %v571_v60 = vand.u32 2147483647, %v477_v43  ;;  %vm567_vm7 = vweird.f32 %v477_v43 }
 0x255   : > { %v550_v44 = vsub.f32 1.0, %v549_v42 }
 0x256   : > { %v574_v63 = vor.u32 1.1754944e-38, %v573_v58  ;;  %vm572_vm9 = vcmp.eq.f32.partialorder %v571_v60, 8.507059e+37 }
 0x257   : > { %v551_v46 = vmul.f32 %v954_v41, %v550_v44 }
 0x259   : > { %v552_v48 = vadd.f32 %v954_v41, %v551_v46 }
 0x25a   : > { %v956_v49 = vpop.eup %955  ;;  %v510_v50 = vpop.f32.mrf.mxu2 }
 0x25b   : > { %v563_v52 = vmul.f32 %v956_v49, %v477_v43  ;;  %v556_v53 = vsel %vm555_vm4, %v954_v41, %v552_v48  ;;  %v480_v54 = vpop.xlane.xlu2 %479  ;;  %vm568_vm6 = vweird.f32 %v956_v49 }
 0x25c   : > { %v561_v55 = vsel %vm558_vm5, %v560_v51, %v556_v53  ;;  %957 = vrcp.f32 %v480_v54  ;;  %vm569_vm8 = vmor %vm567_vm7, %vm568_vm6  ;;  %v587_v7 = vand.u32 2147483648, %v480_v54  ;;  %v585_v9 = vand.u32 2147483647, %v480_v54 }
 0x25d   : > { %v564_v56 = vsub.f32 1.0, %v563_v52  ;;  %v604_v57 = vmul.f32 %v561_v55, %v510_v50  ;;  %vm581_vm11 = vweird.f32 %v480_v54 }
 0x25e   : > { %v588_v13 = vor.u32 1.1754944e-38, %v587_v7  ;;  %vm586_vm13 = vcmp.eq.f32.partialorder %v585_v9, 8.507059e+37 }
 0x25f   : > { %v565_v59 = vmul.f32 %v956_v49, %v564_v56  ;;  %608 = vxpose.xlu2.b32.start [1/2] (short) (narrow) %v604_v57, 8 }
 0x261   : > { %v566_v61 = vadd.f32 %v956_v49, %v565_v59 }
 0x262   : > { %v958_v62 = vpop.eup %957  ;;  %v513_v3 = vpop.f32.mrf.mxu2 }
 0x263   : > { %v577_v0 = vmul.f32 %v958_v62, %v480_v54  ;;  %v570_v1 = vsel %vm569_vm8, %v956_v49, %v566_v61  ;;  %v483_v2 = vpop.xlane.xlu1 %482  ;;  %vm582_vm10 = vweird.f32 %v958_v62 }
 0x264   : > { %v575_v4 = vsel %vm572_vm9, %v574_v63, %v570_v1  ;;  %959 = vrcp.f32 %v483_v2  ;;  %vm583_vm12 = vmor %vm581_vm11, %vm582_vm10  ;;  %v601_v19 = vand.u32 2147483648, %v483_v2  ;;  %v599_v21 = vand.u32 2147483647, %v483_v2 }
 0x265   : > { %v578_v5 = vsub.f32 1.0, %v577_v0  ;;  %v605_v6 = vmul.f32 %v575_v4, %v513_v3  ;;  %vm595_vm15 = vweird.f32 %v483_v2 }
 0x266   : > { %v602_v23 = vor.u32 1.1754944e-38, %v601_v19  ;;  %vm600_vm2 = vcmp.eq.f32.partialorder %v599_v21, 8.507059e+37 }
 0x267   : > { %609 = vxpose.xlu2.b32.end [2/2] (short) (narrow) %v605_v6, 8  ;;  %v579_v8 = vmul.f32 %v958_v62, %v578_v5 }
 0x269   : > { %v580_v10 = vadd.f32 %v958_v62, %v579_v8 }
 0x26a   : > { %v960_v11 = vpop.eup %959  ;;  %v542_v12 = vpop.f32.mrf.mxu3 }
 0x26b   : > { %v591_v14 = vmul.f32 %v960_v11, %v483_v2  ;;  %v584_v15 = vsel %vm583_vm12, %v958_v62, %v580_v10  ;;  %vm596_vm14 = vweird.f32 %v960_v11 }
 0x26c   : > { %v589_v16 = vsel %vm586_vm13, %v588_v13, %v584_v15  ;;  %vm597_vm0 = vmor %vm595_vm15, %vm596_vm14 }
 0x26d   : > { %v592_v17 = vsub.f32 1.0, %v591_v14  ;;  %v606_v18 = vmul.f32 %v589_v16, %v542_v12 }
 0x26f   : > { %640 = vxpose.xlu1.b32.start [1/2] (short) (narrow) %v606_v18, 8  ;;  %v593_v20 = vmul.f32 %v960_v11, %v592_v17 }
 0x271   : > { %v594_v22 = vadd.f32 %v960_v11, %v593_v20 }
 0x272   : > { %v545_v25 = vpop.f32.mrf.mxu3 }
 0x273   : > { %v598_v24 = vsel %vm597_vm0, %v960_v11, %v594_v22 }
 0x274   : > { %v603_v26 = vsel %vm600_vm2, %v602_v23, %v598_v24 }
 0x275   : > { %v607_v27 = vmul.f32 %v603_v26, %v545_v25 }
 0x277   : > { %641 = vxpose.xlu1.b32.end [2/2] (short) (narrow) %v607_v27, 8 }
 0x2f8   : > { %v624_v28 = vpop.trf.xlu2 }
 0x2f9   : > { %672 = vst.msk [vmem:[%s311_s24] sm:$0xff] %vm447_vm1, %v624_v28 }
 0x313   : > { %v656_v29 = vpop.trf.xlu1 }
 0x314   : > { %673 = vst.msk [vmem:[%s311_s24 + $0x8] sm:$0xff] %vm447_vm1, %v656_v29 }
 0x315   : > { %1078 = shalt.err (!%p1075_p13)
}
 0x316   : > { %s1141_s11 = smov 128   ;;  %s1142_s19 = smov 8  }
 0x317   : > { %874 = dma.vmem_to_hbm [thread:$0]  (%p1218_p9), %s691_s21, 256, %s693_s22, %s675_s23, %s1141_s11, %s1141_s11, %s1142_s19  }
 0x318 PF: > { %s1372_s1 = sld [smem:[#allocation14_spill]]  ;;  %s707_s16 = sand.u32 1, %s1117_s12  }
 0x319   : > { %p887_p0 = pnand %p839_p12, %p1225_p11  ;;  %s708_s20 = scalar_lea.sflag [#allocation4], %s707_s16 }
 0x31b   : > { %p888_p1 = pneg %p887_p0 }
 0x31d   : > { %1112 = dma.done.wait (%p888_p1), %s708_s20, 256  }
 0x31e   : > { %1114 = vsyncadd (%p888_p1), %s708_s20, 4294967040  ;;  %s22_s17 = sadd.s32 1, %s1372_s1   ;;  %s1373_s14 = sld [smem:[#allocation12_spill]] }
 0x31f   : > { %p19_p2 = scmp.ge.s32.totalorder %s22_s17, 4   ;;  %s1374_s26 = sld [smem:[#allocation16_spill]] }
 0x320   : > { %s1375_s15 = sld [smem:[#allocation13_spill]]  ;;  %s1377_s12 = smov %s1121_s13 }
 0x321   : > { %s1376_s16 = sld [smem:[#allocation15_spill]]  ;;  %21 = sbr.rel (!%p19_p2) target bundleno = 10 (0xa), region = 101 }
 0x324   : > { %s1378_s13 = smov %s1373_s14 }
 0x325   : > { %s1379_s14 = smov %s1374_s26 }
 0x326   :  { %714 = vsyncpa [#allocation3], 1 }
 0x327   :  { %716 = vsyncpa [#allocation3 + $0x1], 1 }
 0x328   :  { %717 = vsyncpa [#allocation6], 1 }
 0x329   :  { %719 = vsyncpa [#allocation6 + $0x1], 1 }
 0x32a   :  { %720 = vsyncpa [#allocation4], 1 }
 0x32b   :  { %722 = vsyncpa [#allocation4 + $0x1], 1 }

</bundles_post_ra>
